<compile_context>
chip_gen: v7x
topology: tpu7x:2x2x1
jax: 0.10.0
libtpu: 0.0.40
codegen_flags: <defaults>
</compile_context>

<pallas_src>
import functools

import jax
import jax.numpy as jnp
import numpy as np
from jax.experimental import pallas as pl
from jax.experimental.pallas import tpu as pltpu


_IGNORE_SENTINEL = -1                       # in-kernel encoding of ignored frames
_VMEM_BUDGET_BYTES = 20 * 1024 * 1024       # per-step working set (blocks + temps)
_VMEM_LIMIT_BYTES = 40 * 1024 * 1024        # scoped VMEM request (< 64 MiB/TC on v7x)
_MAX_TILE_FRAMES = 256 * 1024               # absolute cap on frames per grid step


# ---------------------------------------------------------------------------
# Kernels
# ---------------------------------------------------------------------------

def _ce_dense_kernel(logits_ref, labels_ref, out_ref):
    """One tile of frames laid out densely on (sublane, lane) = (rows, 128).

    logits_ref: (1, C, rows, 128)  logits of one batch element
    labels_ref: (1, 1, rows, 128)  int8/int32 labels, -1 = ignore (incl. padding)
    out_ref   : (1, 1, 1, 128)     f32 per-tile NLL sum (broadcast across lanes)
    """
    n_cls = logits_ref.shape[1]
    lab = labels_ref[0, 0].astype(jnp.int32)                 # (rows, 128)

    # Pass 1: per-frame max over classes.  Per-class slices stay (rows, 128), so no
    # (C, rows, 128) f32 temporaries ever materialize in VMEM.
    m = logits_ref[0, 0].astype(jnp.float32)
    for k in range(1, n_cls):
        m = jnp.maximum(m, logits_ref[0, k].astype(jnp.float32))

    # Pass 2: exp-sum and target logit, both relative to m (m cancels in the nll).
    se = jnp.zeros_like(m)
    tgt = jnp.zeros_like(m)
    for k in range(n_cls):
        xk = logits_ref[0, k].astype(jnp.float32) - m
        se = se + jnp.exp(xk)
        tgt = tgt + jnp.where(lab == k, xk, 0.0)

    nll = jnp.log(se) - tgt                                  # (rows, 128)
    masked = jnp.where(lab >= 0, nll, 0.0)                   # select, not arithmetic
    partial = jnp.sum(masked)                                # scalar (XLU reduce, idle slot)
    out_ref[0, 0] = jnp.full((1, 128), partial, dtype=jnp.float32)


def _ce_flat_kernel(logits_ref, labels_ref, out_ref):
    """Fallback tile (T not a multiple of 128): classes on sublanes, frames on lanes.

    logits_ref: (1, C, tile_t), labels_ref: (1, 1, tile_t) int32 (-1 = ignore),
    out_ref   : (1, 1, 1, 128)
    """
    x = logits_ref[0].astype(jnp.float32)                    # (C, tile_t)
    lab = labels_ref[0].astype(jnp.int32)                    # (1, tile_t)
    c, tt = x.shape

    m = jnp.max(x, axis=0, keepdims=True)                    # (1, tile_t)
    xm = x - m                                               # reused below
    se = jnp.sum(jnp.exp(xm), axis=0, keepdims=True)
    cls = jax.lax.broadcasted_iota(jnp.int32, (c, tt), 0)
    tgt = jnp.sum(jnp.where(cls == lab, xm, 0.0), axis=0, keepdims=True)

    nll = jnp.log(se) - tgt                                  # (1, tile_t)
    masked = jnp.where(lab >= 0, nll, 0.0)
    partial = jnp.sum(masked)
    out_ref[0, 0] = jnp.full((1, 128), partial, dtype=jnp.float32)


# ---------------------------------------------------------------------------
# Wrappers (tiling + pallas_call)
# ---------------------------------------------------------------------------

def _ce_partials_dense(preds, sent_labels, max_tile_frames):
    """T % 128 == 0 path: frames dense on (sublane, lane)."""
    n, c, t = preds.shape
    tb = t // 128
    itemsize = jnp.dtype(preds.dtype).itemsize

    # VMEM model per 128-frame row: double-buffered logits + labels + ~8 f32
    # (rows, 128) temporaries (m, se, tgt, lab_i32, per-class transients, ...).
    per_row = 128 * (2 * c * itemsize + 2) + 8 * 128 * 4
    rows = int(_VMEM_BUDGET_BYTES // per_row)
    rows = min(rows, _MAX_TILE_FRAMES // 128)
    if max_tile_frames is not None:
        rows = min(rows, max(1, max_tile_frames // 128))

    if rows >= tb:
        rows, num_tt = tb, 1                  # full extent -> always a legal block
    else:
        rows = max(32, (rows // 32) * 32)     # align int8 label tile (32, 128)
        if rows >= tb:
            rows, num_tt = tb, 1
        else:
            num_tt = pl.cdiv(tb, rows)

    tb_pad = num_tt * rows
    lab = sent_labels
    if tb_pad * 128 > t:                      # pad labels ONLY (cheap), never logits
        lab = jnp.pad(lab, ((0, 0), (0, tb_pad * 128 - t)),
                      constant_values=_IGNORE_SENTINEL)
    lab = lab.astype(jnp.int8 if c <= 127 else jnp.int32)
    lab4 = lab.reshape(n, 1, tb_pad, 128)
    preds4 = preds.reshape(n, c, tb, 128)     # free row-major view of (N, C, T)

    return pl.pallas_call(
        _ce_dense_kernel,
        out_shape=jax.ShapeDtypeStruct((n, num_tt, 1, 128), jnp.float32),
        grid_spec=pltpu.PrefetchScalarGridSpec(
            num_scalar_prefetch=0,
            grid=(n, num_tt),
            in_specs=[
                pl.BlockSpec((1, c, rows, 128), lambda b, i: (b, 0, i, 0)),
                pl.BlockSpec((1, 1, rows, 128), lambda b, i: (b, 0, i, 0)),
            ],
            out_specs=pl.BlockSpec((1, 1, 1, 128), lambda b, i: (b, i, 0, 0)),
        ),
        compiler_params=pltpu.CompilerParams(
            dimension_semantics=("parallel", "parallel"),
            vmem_limit_bytes=_VMEM_LIMIT_BYTES,
        ),
    )(preds4, lab4)


def _ce_partials_flat(preds, sent_labels, max_tile_frames):
    """Fallback path for T not a multiple of 128 (classes on sublanes)."""
    n, c, t = preds.shape
    itemsize = jnp.dtype(preds.dtype).itemsize
    c8 = ((c + 7) // 8) * 8

    # VMEM model per frame: double-buffered logits (classes sublane-padded),
    # ~6 (C, tile) f32 temporaries, a handful of (1, tile) rows, labels.
    per_frame = 2 * c8 * itemsize + 6 * c8 * 4 + 8 * 32 + 64
    f = int(_VMEM_BUDGET_BYTES // per_frame)
    f = min(f, 64 * 1024)
    if max_tile_frames is not None:
        f = min(f, max_tile_frames)

    if f >= t:
        tile_t, num_tt = t, 1
    else:
        f = max(128, (f // 128) * 128)
        if f >= t:
            tile_t, num_tt = t, 1
        else:
            tile_t, num_tt = f, pl.cdiv(t, f)

    t_pad = num_tt * tile_t
    lab = sent_labels
    if t_pad > t:
        lab = jnp.pad(lab, ((0, 0), (0, t_pad - t)),
                      constant_values=_IGNORE_SENTINEL)
    lab3 = lab.reshape(n, 1, t_pad)           # int32

    return pl.pallas_call(
        _ce_flat_kernel,
        out_shape=jax.ShapeDtypeStruct((n, num_tt, 1, 128), jnp.float32),
        grid_spec=pltpu.PrefetchScalarGridSpec(
            num_scalar_prefetch=0,
            grid=(n, num_tt),
            in_specs=[
                pl.BlockSpec((1, c, tile_t), lambda b, i: (b, 0, i)),
                pl.BlockSpec((1, 1, tile_t), lambda b, i: (b, 0, i)),
            ],
            out_specs=pl.BlockSpec((1, 1, 1, 128), lambda b, i: (b, i, 0, 0)),
        ),
        compiler_params=pltpu.CompilerParams(
            dimension_semantics=("parallel", "parallel"),
            vmem_limit_bytes=_VMEM_LIMIT_BYTES,
        ),
    )(preds, lab3)


def cross_entropy_loss_pallas(preds, gts, *, ignore_index=255, max_tile_frames=None):
    """nn.CrossEntropyLoss(weight=None, ignore_index=ignore_index, reduction='mean').

    preds: (N, C, T) float logits (f32 or bf16); gts: (N, T) integer labels.
    Returns NaN if every frame is ignored (matches PyTorch's 0/0 behavior).
    """
    n, c, t = preds.shape
    gts = gts.astype(jnp.int32)
    # Re-encode "ignored" as -1 so kernels need a single `lab >= 0` check and label
    # padding can use the same sentinel.
    sent = jnp.where(gts == ignore_index, _IGNORE_SENTINEL, gts)      # (N, T) int32
    count = jnp.sum((gts != ignore_index).astype(jnp.float32))        # valid frames

    if t % 128 == 0:
        partials = _ce_partials_dense(preds, sent, max_tile_frames)
    else:
        partials = _ce_partials_flat(preds, sent, max_tile_frames)

    total = jnp.sum(partials[:, :, 0, 0])
    return total / count


class ActionSegmentationLoss:
    """Pallas port of the PyTorch ActionSegmentationLoss (default config: CE only)."""

    def __init__(self, ce=True, tmse=False, weight=None, threshold=4,
                 ignore_index=255, ce_weight=1.0, tmse_weight=0.15):
        assert weight is None, "per-class weights are not supported by this kernel"
        self.criterions = []
        self.weights = []
        if ce:
            self.criterions.append(
                functools.partial(cross_entropy_loss_pallas,
                                  ignore_index=ignore_index))
            self.weights.append(ce_weight)
        if tmse:
            # TODO(synk): TMSE branch (off by default) needs a masked log-softmax
            # temporal-MSE kernel; not implemented here.
            raise NotImplementedError("TMSE branch not implemented")
        if not self.criterions:
            raise ValueError("You have to choose at least one loss function.")

    def __call__(self, preds, gts, feats):
        loss = 0.0
        for criterion, w in zip(self.criterions, self.weights):
            loss = loss + w * criterion(preds, gts)
        return loss


# ---------------------------------------------------------------------------
# Pure-JAX reference + tests
# ---------------------------------------------------------------------------

def _reference_loss(preds, gts, ignore_index=255, ce_weight=1.0):
    n, c, t = preds.shape
    logits = jnp.transpose(preds, (0, 2, 1)).reshape(n * t, c).astype(jnp.float32)
    labels = gts.reshape(n * t).astype(jnp.int32)
    logp = jax.nn.log_softmax(logits, axis=-1)
    valid = labels != ignore_index
    safe = jnp.where(valid, labels, 0)
    nll = -jnp.take_along_axis(logp, safe[:, None], axis=-1)[:, 0]
    nll = jnp.where(valid, nll, 0.0)
    return ce_weight * (jnp.sum(nll) / jnp.sum(valid.astype(jnp.float32)))


if __name__ == "__main__":
    key = jax.random.PRNGKey(0)
    keys = jax.random.split(key, 8)

    # Case 1: module-level call, tiny shapes (flat path, single tile, T < 128).
    N, C, T = 2, 10, 16
    preds = jax.random.normal(keys[0], (N, C, T), dtype=jnp.float32)
    gts = jax.random.randint(keys[1], (N, T), 0, C, dtype=jnp.int32)
    gts = gts.at[0, :3].set(255).at[1, 10].set(255)          # ignored frames
    feats = jax.random.normal(keys[2], (N, 64, T), dtype=jnp.float32)   # unused
    loss_fn = ActionSegmentationLoss()                        # ce=True, tmse=False
    loss = jax.block_until_ready(loss_fn(preds, gts, feats))
    ref = jax.block_until_ready(_reference_loss(preds, gts))
    np.testing.assert_allclose(np.asarray(loss), np.asarray(ref),
                               rtol=1e-5, atol=1e-5)

    # Case 2: dense path (T % 128 == 0), N=1, multi-tile with a boundary tile
    # (exercises int8 labels, sentinel padding, both-axes-parallel grid).
    N2, C2, T2 = 1, 10, 128 * 40
    preds2 = jax.random.normal(keys[3], (N2, C2, T2), dtype=jnp.float32)
    gts2 = jax.random.randint(keys[4], (N2, T2), 0, C2, dtype=jnp.int32)
    gts2 = gts2.at[0, 100:160].set(255)
    loss2 = jax.block_until_ready(
        cross_entropy_loss_pallas(preds2, gts2, max_tile_frames=4096))
    ref2 = jax.block_until_ready(_reference_loss(preds2, gts2))
    np.testing.assert_allclose(np.asarray(loss2), np.asarray(ref2),
                               rtol=1e-5, atol=1e-5)

    # Case 3: flat path, bf16 logits, multi-tile T with a remainder.
    N3, C3, T3 = 2, 10, 200
    preds3 = jax.random.normal(keys[5], (N3, C3, T3),
                               dtype=jnp.float32).astype(jnp.bfloat16)
    gts3 = jax.random.randint(keys[6], (N3, T3), 0, C3, dtype=jnp.int32)
    gts3 = gts3.at[0, 5:9].set(255)
    loss3 = jax.block_until_ready(
        cross_entropy_loss_pallas(preds3, gts3, max_tile_frames=128))
    ref3 = jax.block_until_ready(_reference_loss(preds3, gts3))
    np.testing.assert_allclose(np.asarray(loss3), np.asarray(ref3),
                               rtol=1e-4, atol=1e-4)

    # Case 4: dense path, bf16, single full-extent tile (rows = T//128 = 10,
    # i.e. not a multiple of 8 -> exercises the full-dim block legality case).
    N4, C4, T4 = 2, 19, 1280
    preds4 = jax.random.normal(keys[7], (N4, C4, T4),
                               dtype=jnp.float32).astype(jnp.bfloat16)
    gts4 = jax.random.randint(keys[0], (N4, T4), 0, C4, dtype=jnp.int32)
    gts4 = gts4.at[1, :7].set(255)
    loss4 = jax.block_until_ready(cross_entropy_loss_pallas(preds4, gts4))
    ref4 = jax.block_until_ready(_reference_loss(preds4, gts4))
    np.testing.assert_allclose(np.asarray(loss4), np.asarray(ref4),
                               rtol=1e-4, atol=1e-4)

    print("KERNEL_OK")
</pallas_src>

<mosaic_0001>
module attributes {stable_mosaic.version = 11 : i64} {
  func.func @_ce_flat_kernel(%arg0: i32, %arg1: i32, %arg2: memref<1x10x16xf32, #tpu.memory_space<vmem>>, %arg3: memref<1x1x16xi32, #tpu.memory_space<vmem>>, %arg4: memref<1x1x1x128xf32, #tpu.memory_space<vmem>>) attributes {dimension_semantics = [#tpu.dimension_semantics<parallel>, #tpu.dimension_semantics<parallel>], iteration_bounds = array<i64: 2, 1>, scalar_prefetch = 0 : i64, scratch_operands = 0 : i64, tpu.core_type = #tpu.core_type<tc>, window_params = [{transform_indices = @transform_0, window_bounds = array<i64: 1, 10, 16>}, {transform_indices = @transform_1, window_bounds = array<i64: 1, 1, 16>}, {transform_indices = @transform_2, window_bounds = array<i64: 1, 1, 1, 128>}]} {
    %c0 = arith.constant 0 : index
    %c0_0 = arith.constant 0 : index
    %c0_1 = arith.constant 0 : index
    %0 = vector.load %arg2[%c0, %c0_0, %c0_1] : memref<1x10x16xf32, #tpu.memory_space<vmem>>, vector<1x10x16xf32>
    %1 = vector.shape_cast %0 : vector<1x10x16xf32> to vector<10x16xf32>
    %c0_2 = arith.constant 0 : index
    %c0_3 = arith.constant 0 : index
    %c0_4 = arith.constant 0 : index
    %2 = vector.load %arg3[%c0_2, %c0_3, %c0_4] : memref<1x1x16xi32, #tpu.memory_space<vmem>>, vector<1x1x16xi32>
    %3 = vector.shape_cast %2 : vector<1x1x16xi32> to vector<1x16xi32>
    %cst = arith.constant dense<0xFF800000> : vector<16xf32>
    %4 = vector.multi_reduction <maximumf>, %1, %cst [0] : vector<10x16xf32> to vector<16xf32>
    %5 = vector.shape_cast %4 : vector<16xf32> to vector<1x16xf32>
    %6 = vector.broadcast %5 : vector<1x16xf32> to vector<10x16xf32>
    %7 = arith.subf %1, %6 : vector<10x16xf32>
    %8 = math.exp %7 : vector<10x16xf32>
    %cst_5 = arith.constant dense<0.000000e+00> : vector<16xf32>
    %9 = vector.multi_reduction <add>, %8, %cst_5 [0] : vector<10x16xf32> to vector<16xf32>
    %10 = vector.shape_cast %9 : vector<16xf32> to vector<1x16xf32>
    %11 = tpu.iota {dimensions = array<i32: 0>} : vector<10x16xi32>
    %12 = vector.broadcast %3 : vector<1x16xi32> to vector<10x16xi32>
    %13 = arith.cmpi eq, %11, %12 : vector<10x16xi32>
    %cst_6 = arith.constant 0.000000e+00 : f32
    %14 = vector.broadcast %cst_6 : f32 to vector<10x16xf32>
    %15 = arith.select %13, %7, %14 : vector<10x16xi1>, vector<10x16xf32>
    %cst_7 = arith.constant dense<0.000000e+00> : vector<16xf32>
    %16 = vector.multi_reduction <add>, %15, %cst_7 [0] : vector<10x16xf32> to vector<16xf32>
    %17 = vector.shape_cast %16 : vector<16xf32> to vector<1x16xf32>
    %18 = math.log %10 : vector<1x16xf32>
    %19 = arith.subf %18, %17 : vector<1x16xf32>
    %c0_i32 = arith.constant 0 : i32
    %20 = vector.broadcast %c0_i32 : i32 to vector<1x16xi32>
    %21 = arith.cmpi sge, %3, %20 : vector<1x16xi32>
    %cst_8 = arith.constant 0.000000e+00 : f32
    %22 = vector.broadcast %cst_8 : f32 to vector<1x16xf32>
    %23 = arith.select %21, %19, %22 : vector<1x16xi1>, vector<1x16xf32>
    %24 = vector.shape_cast %23 : vector<1x16xf32> to vector<1x1x16xf32>
    %cst_9 = arith.constant dense<0.000000e+00> : vector<1xf32>
    %25 = vector.multi_reduction <add>, %24, %cst_9 [1, 2] : vector<1x1x16xf32> to vector<1xf32>
    %26 = vector.shape_cast %25 : vector<1xf32> to vector<1x1x1xf32>
    %27 = vector.extract %26[0, 0, 0] : f32 from vector<1x1x1xf32>
    %28 = vector.broadcast %27 : f32 to vector<1x128xf32>
    %c0_10 = arith.constant 0 : index
    %c0_11 = arith.constant 0 : index
    %c0_12 = arith.constant 0 : index
    %c0_13 = arith.constant 0 : index
    %29 = vector.load %arg4[%c0_10, %c0_11, %c0_12, %c0_13] : memref<1x1x1x128xf32, #tpu.memory_space<vmem>>, vector<1x1x1x128xf32>
    %30 = vector.shape_cast %29 : vector<1x1x1x128xf32> to vector<1x128xf32>
    %31 = vector.shape_cast %28 : vector<1x128xf32> to vector<1x1x1x128xf32>
    tpu.vector_store %arg4[%c0_10, %c0_11, %c0_12, %c0_13], %31 {strides = array<i32>} : memref<1x1x1x128xf32, #tpu.memory_space<vmem>>, vector<1x1x1x128xf32>,
    return
  }
  func.func @transform_0(%arg0: i32, %arg1: i32) -> (i32, i32, i32) {
    %c0_i32 = arith.constant 0 : i32
    %c0_i32_0 = arith.constant 0 : i32
    return %arg0, %c0_i32, %arg1 : i32, i32, i32
  }
  func.func @transform_1(%arg0: i32, %arg1: i32) -> (i32, i32, i32) {
    %c0_i32 = arith.constant 0 : i32
    %c0_i32_0 = arith.constant 0 : i32
    return %arg0, %c0_i32, %arg1 : i32, i32, i32
  }
  func.func @transform_2(%arg0: i32, %arg1: i32) -> (i32, i32, i32, i32) {
    %c0_i32 = arith.constant 0 : i32
    %c0_i32_0 = arith.constant 0 : i32
    %c0_i32_1 = arith.constant 0 : i32
    return %arg0, %arg1, %c0_i32, %c0_i32_0 : i32, i32, i32, i32
  }
}

</mosaic_0001>

<bundles_post_ra>
// kernel: tpu_custom_call.1
= control target key start
LH: loop header
LB: loop body
LE: loop exit
PB: predicated region body
PF: predicated region fallthrough
CT: control target
= control target key end

     0   :  { %7 = vsyncpa [#allocation3], 0  ;;  %s645_s0 = inlined_call_operand.vmem [shape: f32[2,10,16], index: 0, kind: input, shape index: {}]   ;;  %s646_s1 = inlined_call_operand.vmem [shape: s32[2,1,16], index: 1, kind: input, shape index: {}]   ;;  %s647_s2 = inlined_call_operand.hbm [shape: f32[2,1,1,128], index: 2, kind: output, shape index: {}]  }
   0x1   :  { %9 = vsyncpa [#allocation3 + $0x1], 0  ;;  %s524_s9 = smov 0   ;;  %s526_s10 = smov 0  }
   0x2   :  { %s528_s11 = smov 0   ;;  %s530_s12 = smov 0  }
   0x3   :  { %s532_s13 = smov 0   ;;  %s534_s14 = smov 0  }
   0x4 LB: > { %s354_s15 = sadd.s32 4294967295, %s506_s14   ;;  %s355_s16 = sadd.s32 4294967294, %s506_s14   ;;  %s506_s14 = sphi %s534_s14, %s15_s14   ;;  %s502_s13 = sphi %s532_s13, %s654_s13   ;;  %s498_s12 = sphi %s530_s12, %s653_s12   ;;  %s494_s11 = sphi %s528_s11, %s652_s11   ;;  %s490_s10 = sphi %s526_s10, %s651_s10   ;;  %s486_s9 = sphi %s524_s9, %s650_s9  }
   0x5   : > { %s27_s17 = sadd.s32 1, %s502_s13  ;;  %s92_s18 = sadd.s32 1, %s494_s11 }
   0x6   : > { %p29_p0 = scmp.ge.s32.totalorder %s27_s17, 2  ;;  %p102_p1 = scmp.ne.s32.totalorder %s494_s11, %s490_s10 }
   0x7   : > { %p103_p2 = scmp.eq.s32.totalorder %s354_s15, 1  ;;  %p108_p3 = scmp.ne.s32.totalorder %s490_s10, %s486_s9 }
   0x8   : > { %s656_s17 = smov (%p29_p0, %s27_s17), 0  ;;  %p109_p5 = scmp.eq.s32.totalorder %s355_s16, 1 }
   0x9   : > { %p564_p4 = por %p103_p2, %p102_p1  ;;  %s87_s20 = ssub.s32 %s502_s13, %s656_s17 }
   0xa   : > { %p358_p6 = scmp.ge.s32.totalorder %s506_s14, 1  ;;  %p90_p7 = scmp.eq.s32.totalorder %s87_s20, 0 }
   0xb   : > { %p571_p8 = por %p109_p5, %p108_p3  ;;  %p147_p9 = scmp.lt.s32.totalorder %s506_s14, 3 }
   0xc   : > { %s577_s22 = scalar_select %p90_p7, %s494_s11, %s92_s18  }
   0xd   : > { %p148_p10 = pnand %p358_p6, %p147_p9 }
   0xe   : > { %p177_p11 = scmp.lt.s32.totalorder (!%p148_p10), %s498_s12, 1  ;;  %vm194_vm0 = vcmask (!%p148_p10), 130048   ;;  %vm196_vm1 = vcmask (!%p148_p10), 123904   ;;  %v220_v7 = vlaneseq (!%p148_p10)  ;;  %vm245_vm5 = vcmask (!%p148_p10), 122880   ;;  %s175_s3 = sand.u32 (!%p148_p10), 1, %s490_s10  }
   0xf   : > { %151 = sbr.rel (%p148_p10) target bundleno = 309 (0x135), region = 28  ;;  %s176_s4 = scalar_lea.vmem (!%p148_p10), [#allocation2], %s175_s3 }
  0x10   : > { %v221_v10 = vshrl.u32 (!%p148_p10), %v220_v7, 7  ;;  %s272_s5 = sshll.u32 (!%p148_p10), %s176_s4, 4  ;;  %s361_s6 = sshll.u32 (!%p148_p10), %s498_s12, 4  ;;  %s595_s5 = int_to_ptr.vmem [resolvable:$true] %s272_s5 }
  0x11   : > { %s600_s16 = scalar_lea.hbm (!%p148_p10), %s647_s2, %s361_s6  ;;  %s259_s18 = scalar_lea.sflag (!%p148_p10), [#allocation3], %s175_s3 }
  0x12   : > { %v225_v13 = vsub.s32 (!%p148_p10), 0, %v221_v10  ;;  %v222_v19 = vadd.s32 (!%p148_p10), 8, %v221_v10  ;;  %s428_s20 = scalar_lea.vmem (!%p148_p10), %s595_s5, 16 }
  0x13   : > { %p429_p12 = scmp.ne.s32.totalorder (!%p148_p10), %s595_s5, %s428_s20 }
  0x15   : > { %p430_p13 = pnand (!%p148_p10), %p429_p12, %p564_p4 }
  0x16   : > { %s178_s23 = scalar_select %p177_p11, %s498_s12, 1 }
  0x17   : > { %p431_p0 = pneg %p430_p13  ;;  %s508_s12 = smov [#allocation2]  }
  0x18   : > { %s364_s24 = sshll.u32 %s178_s23, 4  ;;  %s190_s30 = scalar_lea.vmem %s646_s1, %s178_s23 }
  0x19   : > { %s184_s27 = scalar_lea.vmem %s645_s0, %s364_s24  ;;  %v193_v14 = vld [vmem:[%s190_s30] sm:$0x1]  ;;  %s432_s23 = sshll.u32 %s508_s12, 4  ;;  %s433_s23 = int_to_ptr.vmem [resolvable:$false] %s432_s23 }
  0x1a   : > { %v191_v0 = vld [vmem:[%s184_s27] sm:$0xff]  ;;  %v192_v1 = vld [vmem:[%s184_s27 + $0x8] sm:$0x3]  ;;  %v226_v20 = vrot.slane %v193_v14, %v225_v13  ;;  %vm243_vm4 = vcmp.ge.s32.totalorder %v193_v14, 0  ;;  %s434_s24 = scalar_lea.vmem %s433_s23, 32  ;;  %p435_p1 = scmp.lt.s32.totalorder %s595_s5, %s433_s23 }
  0x1b   : > { %v195_v2 = vsel %vm194_vm0, %v191_v0, -inf  ;;  %v197_v3 = vsel %vm196_vm1, %v192_v1, -inf  ;;  %p436_p2 = scmp.lt.s32.totalorder %s434_s24, %s428_s20 }
  0x1c   : > { %v198_v4 = vmax.f32 %v195_v2, %v197_v3  ;;  %vm227_vm2 = vcmp.eq.s32.totalorder %v221_v10, %v226_v20  ;;  %vm228_vm3 = vcmp.eq.s32.totalorder %v222_v19, %v226_v20 }
  0x1d   : > { %p437_p3 = por %p436_p2, %p435_p1 }
  0x1e   : > { %v199_v5 = vrot.slane %v198_v4, 4 }
  0x1f   : > { %p438_p5 = pnand %p437_p3, %p431_p0 }
  0x20   : > { %v200_v6 = vmax.f32 %v198_v4, %v199_v5 }
  0x22   : > { %v201_v8 = vrot.slane %v200_v6, 2 }
  0x24   : > { %v202_v9 = vmax.f32 %v200_v6, %v201_v8 }
  0x26   : > { %v203_v11 = vrot.slane %v202_v9, 1 }
  0x28   : > { %v204_v12 = vmax.f32 %v202_v9, %v203_v11 }
  0x2a   : > { %v205_v15 = vsub.f32 %v191_v0, %v204_v12  ;;  %v206_v16 = vsub.f32 %v192_v1, %v204_v12 }
  0x2c   : > { %v207_v17 = vmul.f32 1.442695, %v205_v15  ;;  %v209_v18 = vmul.f32 1.442695, %v206_v16  ;;  %v229_v21 = vsel %vm227_vm2, %v205_v15, 0.0  ;;  %v230_v22 = vsel %vm228_vm3, %v206_v16, 0.0 }
  0x2d   : > { %v231_v23 = vsel %vm194_vm0, %v229_v21, 0.0  ;;  %v232_v24 = vsel %vm196_vm1, %v230_v22, 0.0 }
  0x2e   : > { %422 = vpow2.f32 %v207_v17  ;;  %v233_v29 = vadd.f32 %v232_v24, %v231_v23 }
  0x2f   : > { %424 = vpow2.f32 %v209_v18 }
  0x30   : > { %v234_v32 = vrot.slane %v233_v29, 4 }
  0x32   : > { %v235_v35 = vadd.f32 %v234_v32, %v233_v29 }
  0x34   : > { %v236_v38 = vrot.slane %v235_v35, 2 }
  0x36   : > { %v237_v40 = vadd.f32 %v236_v38, %v235_v35 }
  0x38   : > { %v423_v25 = vpop.eup %422  ;;  %v238_v41 = vrot.slane %v237_v40, 1 }
  0x39   : > { %v425_v26 = vpop.eup %424  ;;  %v211_v27 = vsel %vm194_vm0, %v423_v25, 0.0 }
  0x3a   : > { %v212_v28 = vsel %vm196_vm1, %v425_v26, 0.0  ;;  %v239_v42 = vadd.f32 %v238_v41, %v237_v40 }
  0x3b   : > { %v213_v30 = vadd.f32 %v212_v28, %v211_v27 }
  0x3d   : > { %v214_v31 = vrot.slane %v213_v30, 4 }
  0x3f   : > { %v215_v33 = vadd.f32 %v214_v31, %v213_v30 }
  0x41   : > { %v216_v34 = vrot.slane %v215_v33, 2 }
  0x43   : > { %v217_v36 = vadd.f32 %v216_v34, %v215_v33 }
  0x45   : > { %v218_v37 = vrot.slane %v217_v36, 1 }
  0x47   : > { %v219_v39 = vadd.f32 %v218_v37, %v217_v36 }
  0x49   : > { %426 = vlog2.f32 %v219_v39 }
  0x53   : > { %v427_v43 = vpop.eup %426 }
  0x54   : > { %v241_v44 = vmul.f32 0.6931472, %v427_v43 }
  0x56   : > { %v242_v45 = vsub.f32 %v241_v44, %v239_v42 }
  0x58   : > { %v244_v46 = vsel %vm243_vm4, %v242_v45, 0.0 }
  0x59   : > { %v246_v47 = vsel %vm245_vm5, %v244_v46, 0.0 }
  0x5a   : > { %247 = vadd.xlane.f32.xlu0 %v246_v47 }
  0xe7   : > { %v248_v48 = vpop.xlane.xlu0 %247 }
  0xe8   : > { %v249_v49 = vrot.slane %v248_v48, 4 }
  0xea   : > { %v250_v50 = vadd.f32 %v249_v49, %v248_v48 }
  0xec   : > { %v251_v51 = vrot.slane %v250_v50, 2 }
  0xee   : > { %v252_v52 = vadd.f32 %v251_v51, %v250_v50 }
  0xf0   : > { %v253_v53 = vrot.slane %v252_v52, 1 }
  0xf2   : > { %v254_v54 = vadd.f32 %v253_v53, %v252_v52 }
  0xf4   : > { %365 = vpush %v254_v54 }
 0x125   : > { %s366_s7 = spop %365 }
 0x126   : > { %v256_v55 = vstv %s366_s7 }
 0x127   : > { %257 = vst [vmem:[%s176_s4] sm:$0x1] %v256_v55 }
 0x128   : > { %441 = shalt.err (!%p438_p5)
}
 0x129   : > { %s442_s25 = scalar_lea.hbm %s600_s16, 16  ;;  %s446_s28 = scalar_lea.hbm %s647_s2, 32 }
 0x12a   : > { %p443_p6 = scmp.ne.s32.totalorder %s600_s16, %s442_s25  ;;  %p447_p10 = scmp.lt.u32.totalorder %s600_s16, %s647_s2 }
 0x12b   : > { %p448_p11 = scmp.lt.u32.totalorder %s446_s28, %s442_s25  ;;  %p450_p13 = scmp.lt.u32.totalorder %s442_s25, %s600_s16 }
 0x12c   : > { %p444_p7 = pnand %p443_p6, %p564_p4 }
 0x12d   : > { %p449_p12 = por %p448_p11, %p447_p10 }
 0x12e   : > { %p445_p9 = pneg %p444_p7 }
 0x12f   : > { %p451_p0 = por %p450_p13, %p449_p12 }
 0x131   : > { %p452_p1 = pnand %p451_p0, %p445_p9 }
 0x133   : > { %455 = shalt.err (!%p452_p1)
}
 0x134   : > { %367 = dma.vmem_to_hbm [thread:$0]  (%p564_p4), %s595_s5, 16, %s600_s16, %s259_s18  }
 0x135 PF: > { %p373_p2 = scmp.ge.s32.totalorder %s506_s14, 2  ;;  %s284_s3 = sand.u32 1, %s486_s9  }
 0x136   : > { %s285_s4 = scalar_lea.sflag [#allocation3], %s284_s3 }
 0x137   : > { %p370_p3 = pnand %p373_p2, %p571_p8 }
 0x139   : > { %481 = dma.done.wait (!%p370_p3), %s285_s4, 16  }
 0x13a   : > { %483 = vsyncadd (!%p370_p3), %s285_s4, 4294967280  ;;  %s15_s14 = sadd.s32 1, %s506_s14   ;;  %s650_s9 = smov %s490_s10 }
 0x13b   : > { %p12_p5 = scmp.ge.s32.totalorder %s15_s14, 4   ;;  %s651_s10 = smov %s494_s11 }
 0x13c   : > { %s652_s11 = smov %s577_s22  ;;  %s653_s12 = smov %s502_s13 }
 0x13d   : > { %s654_s13 = smov %s656_s17  ;;  %14 = sbr.rel (!%p12_p5) target bundleno = 4 (0x4), region = 66 }
 0x144   :  { %289 = vsyncpa [#allocation3], 1 }
 0x145   :  { %291 = vsyncpa [#allocation3 + $0x1], 1 }

</bundles_post_ra>
